<compile_context>
chip_gen: v5e
topology: v5e:2x2
jax: 0.10.0
libtpu: 0.0.40
codegen_flags: <defaults>
</compile_context>

<pallas_src>
import functools

import jax
import jax.numpy as jnp
from jax.experimental import pallas as pl
from jax.experimental.pallas import tpu as pltpu


def _round_up(x: int, m: int) -> int:
    return (x + m - 1) // m * m


def f2_kernel(x_ref, w0_ref, b0_ref, w1_ref, b1_ref, w2_ref, b2_ref, out_ref):
    # Cast the x tile to bf16 in-kernel (f32 stream from HBM, bf16 into MXU).
    x = x_ref[...].astype(jnp.bfloat16)
    # Layer 0: (tm, d) @ (d, h0) + (1, h0) -> relu   (f32 accumulate)
    h = jnp.dot(x, w0_ref[...], preferred_element_type=jnp.float32)
    h = jnp.maximum(h + b0_ref[...], 0.0)
    # Layer 1: (tm, h0) @ (h0, h1) + (1, h1) -> relu
    h = jnp.dot(h.astype(jnp.bfloat16), w1_ref[...],
                preferred_element_type=jnp.float32)
    h = jnp.maximum(h + b1_ref[...], 0.0)
    # Layer 2: (tm, h1) @ (h1, kp) + (1, kp)   (logits, no activation)
    out = jnp.dot(h.astype(jnp.bfloat16), w2_ref[...],
                  preferred_element_type=jnp.float32)
    out_ref[...] = out + b2_ref[...]


def prepare_f2_params(w0, b0, w1, b1, w2, b2, *, lane=128):
    """Pre-pack params once (call-invariant): bf16 weights, f32 biases,
    logits dim padded to a multiple of `lane` for a lane-dense output store."""
    k = w2.shape[1]
    kp = _round_up(k, lane)
    w2p = jnp.pad(w2, ((0, 0), (0, kp - k))).astype(jnp.bfloat16)
    b2p = jnp.pad(b2, ((0, 0), (0, kp - k))).astype(jnp.float32)
    packed = (w0.astype(jnp.bfloat16), b0.astype(jnp.float32),
              w1.astype(jnp.bfloat16), b1.astype(jnp.float32),
              w2p, b2p)
    return packed, k


def _pick_tile(n: int, tm: int) -> int:
    # Clamp tile to the batch (sublane-packing-friendly multiple of 16).
    tm = max(16, min(tm, _round_up(n, 16)))
    # Prefer >=2 grid steps (each >=128 rows) so v7x's two TCs both get work.
    if n >= 256 and pl.cdiv(n, tm) < 2:
        tm = _round_up(pl.cdiv(n, 2), 128)
    return tm


@functools.partial(jax.jit, static_argnames=("k", "tm"))
def f2_forward_packed(x, packed, *, k, tm=512):
    """x: (n, d) f32.  packed: output of prepare_f2_params.  Returns (n, k) f32."""
    w0, b0, w1, b1, w2p, b2p = packed
    n, d = x.shape
    h0, h1, kp = w0.shape[1], w1.shape[1], w2p.shape[1]

    tm = _pick_tile(n, tm)
    grid = (pl.cdiv(n, tm),)
    resident = lambda i: (0, 0)   # weights/biases: same block every grid step

    flops = 2 * n * (d * h0 + h0 * h1 + h1 * kp)
    bytes_accessed = (n * d * 4                                  # x (f32)
                      + (w0.size + w1.size + w2p.size) * 2       # bf16 weights
                      + (b0.size + b1.size + b2p.size) * 4       # f32 biases
                      + n * kp * 4)                              # f32 logits

    out = pl.pallas_call(
        f2_kernel,
        out_shape=jax.ShapeDtypeStruct((n, kp), jnp.float32),
        grid=grid,
        in_specs=[
            pl.BlockSpec((tm, d), lambda i: (i, 0)),   # x tile (rows i), f32
            pl.BlockSpec((d, h0), resident),           # w0 (full dims)
            pl.BlockSpec((1, h0), resident),           # b0
            pl.BlockSpec((h0, h1), resident),          # w1 (full dims)
            pl.BlockSpec((1, h1), resident),           # b1
            pl.BlockSpec((h1, kp), resident),          # w2 (padded to kp)
            pl.BlockSpec((1, kp), resident),           # b2
        ],
        out_specs=pl.BlockSpec((tm, kp), lambda i: (i, 0)),
        compiler_params=pltpu.CompilerParams(
            dimension_semantics=("parallel",)),
        cost_estimate=pl.CostEstimate(
            flops=flops, bytes_accessed=bytes_accessed, transcendentals=0),
    )(x, w0, b0, w1, b1, w2p, b2p)

    return out[:, :k]


def f2_forward(x, w0, b0, w1, b1, w2, b2, *, tm=512):
    """Convenience one-shot wrapper (packs params inline)."""
    packed, k = prepare_f2_params(w0, b0, w1, b1, w2, b2)
    return f2_forward_packed(x, packed, k=k, tm=tm)


def init_f2_params(key, h0, h1, d, k):
    """PyTorch-style Uniform(-1/sqrt(fan_in), 1/sqrt(fan_in)) init."""
    keys = jax.random.split(key, 6)

    def u(kk, shape, fan_in):
        a = 1.0 / jnp.sqrt(jnp.float32(fan_in))
        return jax.random.uniform(kk, shape, jnp.float32, minval=-a, maxval=a)

    w0 = u(keys[0], (d, h0), d)
    b0 = u(keys[1], (1, h0), d)
    w1 = u(keys[2], (h0, h1), h0)
    b1 = u(keys[3], (1, h1), h0)
    w2 = u(keys[4], (h1, k), h1)
    b2 = u(keys[5], (1, k), h1)
    return w0, b0, w1, b1, w2, b2


def f2_reference_bf16(x, w0, b0, w1, b1, w2, b2):
    """Reference with matching bf16-in / f32-accumulate matmul precision."""
    bf = jnp.bfloat16
    h = jnp.maximum(jnp.dot(x.astype(bf), w0.astype(bf),
                            preferred_element_type=jnp.float32) + b0, 0.0)
    h = jnp.maximum(jnp.dot(h.astype(bf), w1.astype(bf),
                            preferred_element_type=jnp.float32) + b1, 0.0)
    return jnp.dot(h.astype(bf), w2.astype(bf),
                   preferred_element_type=jnp.float32) + b2


def f2_reference_f32(x, w0, b0, w1, b1, w2, b2):
    h = jnp.maximum(x @ w0 + b0, 0.0)
    h = jnp.maximum(h @ w1 + b1, 0.0)
    return h @ w2 + b2


if __name__ == "__main__":
    # MNIST-shaped F2: d=784 features, h0=64, h1=32, k=10 classes; n=256 rows
    # so the tile picker yields a 2-step grid (tm=128) exercising the
    # parallel batch axis / pipeline.
    n, d, h0, h1, k = 256, 784, 64, 32, 10

    key = jax.random.PRNGKey(0)
    kx, kp_ = jax.random.split(key)
    x = jax.random.normal(kx, (n, d), dtype=jnp.float32)
    params = init_f2_params(kp_, h0, h1, d, k)

    # Pre-pack weights once (call-invariant), then run the kernel.
    packed, k_out = prepare_f2_params(*params)
    out = f2_forward_packed(x, packed, k=k_out)
    out = jax.block_until_ready(out)
    assert out.shape == (n, k), out.shape

    # Tight check vs a reference with identical (bf16-in, f32-acc) precision.
    ref_bf16 = f2_reference_bf16(x, *params)
    assert jnp.allclose(out, ref_bf16, atol=1e-4, rtol=1e-4), \
        "mismatch vs bf16-precision reference"

    # Loose sanity check vs the pure-f32 forward (bf16 rounding of inputs).
    ref_f32 = f2_reference_f32(x, *params)
    assert jnp.allclose(out, ref_f32, atol=5e-2, rtol=5e-2), \
        "mismatch vs f32 reference"

    print("KERNEL_OK")
</pallas_src>

<mosaic_0001>
module attributes {stable_mosaic.version = 11 : i64} {
  func.func @f2_kernel(%arg0: i32, %arg1: memref<128x784xf32, #tpu.memory_space<vmem>>, %arg2: memref<784x64xbf16, #tpu.memory_space<vmem>>, %arg3: memref<1x64xf32, #tpu.memory_space<vmem>>, %arg4: memref<64x32xbf16, #tpu.memory_space<vmem>>, %arg5: memref<1x32xf32, #tpu.memory_space<vmem>>, %arg6: memref<32x128xbf16, #tpu.memory_space<vmem>>, %arg7: memref<1x128xf32, #tpu.memory_space<vmem>>, %arg8: memref<128x128xf32, #tpu.memory_space<vmem>>) attributes {dimension_semantics = [#tpu.dimension_semantics<parallel>], iteration_bounds = array<i64: 2>, scalar_prefetch = 0 : i64, scratch_operands = 0 : i64, tpu.core_type = #tpu.core_type<tc>, window_params = [{transform_indices = @transform_0, window_bounds = array<i64: 128, 784>}, {pipeline_mode = #tpu.pipeline_mode<synchronous>, transform_indices = @transform_1, window_bounds = array<i64: 784, 64>}, {pipeline_mode = #tpu.pipeline_mode<synchronous>, transform_indices = @transform_2, window_bounds = array<i64: 1, 64>}, {pipeline_mode = #tpu.pipeline_mode<synchronous>, transform_indices = @transform_3, window_bounds = array<i64: 64, 32>}, {pipeline_mode = #tpu.pipeline_mode<synchronous>, transform_indices = @transform_4, window_bounds = array<i64: 1, 32>}, {pipeline_mode = #tpu.pipeline_mode<synchronous>, transform_indices = @transform_5, window_bounds = array<i64: 32, 128>}, {pipeline_mode = #tpu.pipeline_mode<synchronous>, transform_indices = @transform_6, window_bounds = array<i64: 1, 128>}, {transform_indices = @transform_7, window_bounds = array<i64: 128, 128>}]} {
    %c0 = arith.constant 0 : index
    %c0_0 = arith.constant 0 : index
    %0 = vector.load %arg1[%c0, %c0_0] : memref<128x784xf32, #tpu.memory_space<vmem>>, vector<128x784xf32>
    %1 = arith.truncf %0 : vector<128x784xf32> to vector<128x784xbf16>
    %c0_1 = arith.constant 0 : index
    %c0_2 = arith.constant 0 : index
    %2 = vector.load %arg2[%c0_1, %c0_2] : memref<784x64xbf16, #tpu.memory_space<vmem>>, vector<784x64xbf16>
    %cst = arith.constant dense<0.000000e+00> : vector<128x64xf32>
    %3 = tpu.matmul %1, %2, %cst {dimension_numbers = #tpu.dot_dimension_numbers<[1], [0], [0], [1], [0, 0, 1, 1], [], []>} : vector<128x784xbf16>, vector<784x64xbf16>, vector<128x64xf32> -> vector<128x64xf32>
    %c0_3 = arith.constant 0 : index
    %c0_4 = arith.constant 0 : index
    %4 = vector.load %arg3[%c0_3, %c0_4] : memref<1x64xf32, #tpu.memory_space<vmem>>, vector<1x64xf32>
    %5 = vector.broadcast %4 : vector<1x64xf32> to vector<128x64xf32>
    %6 = arith.addf %3, %5 : vector<128x64xf32>
    %cst_5 = arith.constant 0.000000e+00 : f32
    %7 = vector.broadcast %cst_5 : f32 to vector<128x64xf32>
    %8 = arith.maximumf %6, %7 : vector<128x64xf32>
    %9 = arith.truncf %8 : vector<128x64xf32> to vector<128x64xbf16>
    %c0_6 = arith.constant 0 : index
    %c0_7 = arith.constant 0 : index
    %10 = vector.load %arg4[%c0_6, %c0_7] : memref<64x32xbf16, #tpu.memory_space<vmem>>, vector<64x32xbf16>
    %cst_8 = arith.constant dense<0.000000e+00> : vector<128x32xf32>
    %11 = tpu.matmul %9, %10, %cst_8 {dimension_numbers = #tpu.dot_dimension_numbers<[1], [0], [0], [1], [0, 0, 1, 1], [], []>} : vector<128x64xbf16>, vector<64x32xbf16>, vector<128x32xf32> -> vector<128x32xf32>
    %c0_9 = arith.constant 0 : index
    %c0_10 = arith.constant 0 : index
    %12 = vector.load %arg5[%c0_9, %c0_10] : memref<1x32xf32, #tpu.memory_space<vmem>>, vector<1x32xf32>
    %13 = vector.broadcast %12 : vector<1x32xf32> to vector<128x32xf32>
    %14 = arith.addf %11, %13 : vector<128x32xf32>
    %cst_11 = arith.constant 0.000000e+00 : f32
    %15 = vector.broadcast %cst_11 : f32 to vector<128x32xf32>
    %16 = arith.maximumf %14, %15 : vector<128x32xf32>
    %17 = arith.truncf %16 : vector<128x32xf32> to vector<128x32xbf16>
    %c0_12 = arith.constant 0 : index
    %c0_13 = arith.constant 0 : index
    %18 = vector.load %arg6[%c0_12, %c0_13] : memref<32x128xbf16, #tpu.memory_space<vmem>>, vector<32x128xbf16>
    %cst_14 = arith.constant dense<0.000000e+00> : vector<128x128xf32>
    %19 = tpu.matmul %17, %18, %cst_14 {dimension_numbers = #tpu.dot_dimension_numbers<[1], [0], [0], [1], [0, 0, 1, 1], [], []>} : vector<128x32xbf16>, vector<32x128xbf16>, vector<128x128xf32> -> vector<128x128xf32>
    %c0_15 = arith.constant 0 : index
    %c0_16 = arith.constant 0 : index
    %20 = vector.load %arg7[%c0_15, %c0_16] : memref<1x128xf32, #tpu.memory_space<vmem>>, vector<1x128xf32>
    %21 = vector.broadcast %20 : vector<1x128xf32> to vector<128x128xf32>
    %22 = arith.addf %19, %21 : vector<128x128xf32>
    %c0_17 = arith.constant 0 : index
    %c0_18 = arith.constant 0 : index
    %23 = vector.load %arg8[%c0_17, %c0_18] : memref<128x128xf32, #tpu.memory_space<vmem>>, vector<128x128xf32>
    tpu.vector_store %arg8[%c0_17, %c0_18], %22 {strides = array<i32>} : memref<128x128xf32, #tpu.memory_space<vmem>>, vector<128x128xf32>,
    return
  }
  func.func @transform_0(%arg0: i32) -> (i32, i32) {
    %c0_i32 = arith.constant 0 : i32
    %c0_i32_0 = arith.constant 0 : i32
    return %arg0, %c0_i32 : i32, i32
  }
  func.func @transform_1(%arg0: i32) -> (i32, i32) {
    %c0_i32 = arith.constant 0 : i32
    %c0_i32_0 = arith.constant 0 : i32
    %c0_i32_1 = arith.constant 0 : i32
    return %c0_i32, %c0_i32_0 : i32, i32
  }
  func.func @transform_2(%arg0: i32) -> (i32, i32) {
    %c0_i32 = arith.constant 0 : i32
    %c0_i32_0 = arith.constant 0 : i32
    %c0_i32_1 = arith.constant 0 : i32
    return %c0_i32, %c0_i32_0 : i32, i32
  }
  func.func @transform_3(%arg0: i32) -> (i32, i32) {
    %c0_i32 = arith.constant 0 : i32
    %c0_i32_0 = arith.constant 0 : i32
    %c0_i32_1 = arith.constant 0 : i32
    return %c0_i32, %c0_i32_0 : i32, i32
  }
  func.func @transform_4(%arg0: i32) -> (i32, i32) {
    %c0_i32 = arith.constant 0 : i32
    %c0_i32_0 = arith.constant 0 : i32
    %c0_i32_1 = arith.constant 0 : i32
    return %c0_i32, %c0_i32_0 : i32, i32
  }
  func.func @transform_5(%arg0: i32) -> (i32, i32) {
    %c0_i32 = arith.constant 0 : i32
    %c0_i32_0 = arith.constant 0 : i32
    %c0_i32_1 = arith.constant 0 : i32
    return %c0_i32, %c0_i32_0 : i32, i32
  }
  func.func @transform_6(%arg0: i32) -> (i32, i32) {
    %c0_i32 = arith.constant 0 : i32
    %c0_i32_0 = arith.constant 0 : i32
    %c0_i32_1 = arith.constant 0 : i32
    return %c0_i32, %c0_i32_0 : i32, i32
  }
  func.func @transform_7(%arg0: i32) -> (i32, i32) {
    %c0_i32 = arith.constant 0 : i32
    %c0_i32_0 = arith.constant 0 : i32
    return %arg0, %c0_i32 : i32, i32
  }
}

</mosaic_0001>

<bundles_post_ra>
// kernel: f2_forward_packed.1
= control target key start
LH: loop header
LB: loop body
LE: loop exit
PB: predicated region body
PF: predicated region fallthrough
CT: control target
= control target key end

     0   :  { %s1936_s24 = smov 0   ;;  %s2386_s0 = inlined_call_operand.vmem [shape: f32[256,784], index: 0, kind: input, shape index: {}]   ;;  %s2387_s1 = inlined_call_operand.vmem [shape: bf16[784,64], index: 1, kind: input, shape index: {}]   ;;  %s2388_s2 = inlined_call_operand.vmem [shape: f32[1,64], index: 2, kind: input, shape index: {}]   ;;  %s2389_s3 = inlined_call_operand.vmem [shape: bf16[64,32], index: 3, kind: input, shape index: {}]   ;;  %s2390_s4 = inlined_call_operand.vmem [shape: f32[1,32], index: 4, kind: input, shape index: {}]   ;;  %s2391_s5 = inlined_call_operand.vmem [shape: bf16[32,128], index: 5, kind: input, shape index: {}]   ;;  %s2392_s6 = inlined_call_operand.vmem [shape: f32[1,128], index: 6, kind: input, shape index: {}]   ;;  %s2393_s7 = inlined_call_operand.vmem [shape: f32[256,128], index: 7, kind: output, shape index: {}]  }
   0x1 LB: > { %s1542_s25 = sadd.s32 4294967295, %s1894_s24   ;;  %p1546_p0 = scmp.ge.s32.totalorder %s1894_s24, 1  ;;  %s1894_s24 = sphi %s1936_s24, %s17_s24  }
   0x2   : > { %p239_p1 = scmp.lt.s32.totalorder %s1894_s24, 3 }
   0x4   : > { %p240_p2 = pnand %p1546_p0, %p239_p1 }
   0x5   : > { %s1547_s9 = sshll.u32 (!%p240_p2), %s1542_s25, 4 }
   0x6   : > { %243 = sbr.rel (%p240_p2) target bundleno = 744 (0x2e8), region = 48  ;;  %p273_p3 = scmp.lt.s32.totalorder (!%p240_p2), %s1547_s9, 31 }
   0xb   : > { %v1804_v0 = vld [vmem:[%s2387_s1 + $0x38] sm:$0xff]  ;;  %v1803_v1 = vld [vmem:[%s2387_s1 + $0x30] sm:$0xff]  ;;  %v1802_v2 = vld [vmem:[%s2387_s1 + $0x28] sm:$0xff]  ;;  %s2395_s9 = smov (!%p273_p3, %s1547_s9), 31  ;;  %vm850_vm0 = vcmask 130048   ;;  %vm1278_vm1 = vcmask 523264  }
   0xc   : > { %1852 = vmatpush.bf16.msra.mxu1 %v1804_v0  ;;  %1853 = vmatpush.bf16.msra.mxu2 %v1804_v0  ;;  %v1801_v3 = vld [vmem:[%s2387_s1 + $0x20] sm:$0xff]  ;;  %v1800_v4 = vld [vmem:[%s2387_s1 + $0x18] sm:$0xff]  ;;  %v1799_v5 = vld [vmem:[%s2387_s1 + $0x10] sm:$0xff]  ;;  %s1876_s16 = smul.u32 56, %s2395_s9  ;;  %vm1396_vm2 = vcmask 261120   ;;  %s1550_s20 = sshll.u32 %s2395_s9, 3 }
   0xd   : > { %1854 = vmatpush.bf16.msra.mxu3 %v1804_v0  ;;  %875 = vmatpush.bf16.msra.mxu0 %v1804_v0  ;;  %v1798_v6 = vld [vmem:[%s2387_s1 + $0x8] sm:$0xff]  ;;  %v1797_v7 = vld [vmem:[%s2387_s1] sm:$0xff]  ;;  %v1820_v12 = vld [vmem:[%s2387_s1 + $0xb8] sm:$0xff]  ;;  %s2365_s27 = scalar_lea.vmem %s2393_s7, %s1550_s20 }
   0xe   : > { %s1971_s21 = scalar_lea.vmem %s2386_s0, %s1876_s16  ;;  %v1812_v15 = vld [vmem:[%s2387_s1 + $0x78] sm:$0xff]  ;;  %v1819_v22 = vld [vmem:[%s2387_s1 + $0xb0] sm:$0xff]  ;;  %v1818_v27 = vld [vmem:[%s2387_s1 + $0xa8] sm:$0xff] }
   0xf   : > { %v314_v8 = vld [vmem:[%s1971_s21 + $0xe0] sm:$0xff]  ;;  %v321_v9 = vld [vmem:[%s1971_s21 + $0x118] sm:$0xff]  ;;  %v1811_v24 = vld [vmem:[%s2387_s1 + $0x70] sm:$0xff] }
  0x10   : > { %1855 = vmatpush.bf16.msra.mxu1 %v1803_v1  ;;  %1856 = vmatpush.bf16.msra.mxu2 %v1803_v1  ;;  %v342_v10 = vld [vmem:[%s1971_s21 + $0x1c0] sm:$0xff]  ;;  %v349_v11 = vld [vmem:[%s1971_s21 + $0x1f8] sm:$0xff]  ;;  %v412_v17 = vpack.c.bf16 %v321_v9, %v314_v8  ;;  %v1827_v25 = vld [vmem:[%s2387_s1 + $0xf0] sm:$0xff] }
  0x11   : > { %1857 = vmatpush.bf16.msra.mxu3 %v1803_v1  ;;  %876 = vmatpush.bf16.msra.mxu0 %v1803_v1  ;;  %v370_v13 = vld [vmem:[%s1971_s21 + $0x2a0] sm:$0xff]  ;;  %v377_v14 = vld [vmem:[%s1971_s21 + $0x2d8] sm:$0xff]  ;;  %v426_v18 = vpack.c.bf16 %v349_v11, %v342_v10  ;;  %v1835_v28 = vld [vmem:[%s2387_s1 + $0x130] sm:$0xff] }
  0x12   : > { %v1828_v16 = vld [vmem:[%s2387_s1 + $0xf8] sm:$0xff]  ;;  %v440_v19 = vpack.c.bf16 %v377_v14, %v370_v13  ;;  %v286_v20 = vld [vmem:[%s1971_s21] sm:$0xff]  ;;  %v1810_v29 = vld [vmem:[%s2387_s1 + $0x68] sm:$0xff] }
  0x13   : > { %v293_v21 = vld [vmem:[%s1971_s21 + $0x38] sm:$0xff]  ;;  %v1826_v30 = vld [vmem:[%s2387_s1 + $0xe8] sm:$0xff]  ;;  %v1817_v31 = vld [vmem:[%s2387_s1 + $0xa0] sm:$0xff] }
  0x14   : > { %1858 = vmatpush.bf16.msra.mxu1 %v1802_v2  ;;  %1859 = vmatpush.bf16.msra.mxu2 %v1802_v2  ;;  %v1836_v23 = vld [vmem:[%s2387_s1 + $0x138] sm:$0xff]  ;;  %v398_v26 = vpack.c.bf16 %v293_v21, %v286_v20  ;;  %v1834_v32 = vld [vmem:[%s2387_s1 + $0x128] sm:$0xff]  ;;  %v1809_v33 = vld [vmem:[%s2387_s1 + $0x60] sm:$0xff] }
  0x15   : > { %1860 = vmatpush.bf16.msra.mxu3 %v1802_v2  ;;  %877 = vmatpush.bf16.msra.mxu0 %v1802_v2  ;;  %v1825_v34 = vld [vmem:[%s2387_s1 + $0xe0] sm:$0xff]  ;;  %v328_v35 = vld [vmem:[%s1971_s21 + $0x150] sm:$0xff]  ;;  %v335_v36 = vld [vmem:[%s1971_s21 + $0x188] sm:$0xff] }
  0x16   : > { %v356_v37 = vld [vmem:[%s1971_s21 + $0x230] sm:$0xff]  ;;  %v363_v38 = vld [vmem:[%s1971_s21 + $0x268] sm:$0xff]  ;;  %v1816_v39 = vld [vmem:[%s2387_s1 + $0x98] sm:$0xff]  ;;  %v419_v45 = vpack.c.bf16 %v335_v36, %v328_v35 }
  0x17   : > { %v384_v40 = vld [vmem:[%s1971_s21 + $0x310] sm:$0xff]  ;;  %v391_v41 = vld [vmem:[%s1971_s21 + $0x348] sm:$0xff]  ;;  %v1833_v42 = vld [vmem:[%s2387_s1 + $0x120] sm:$0xff]  ;;  %v433_v46 = vpack.c.bf16 %v363_v38, %v356_v37 }
  0x18   : > { %1861 = vmatpush.bf16.msra.mxu1 %v1801_v3  ;;  %1862 = vmatpush.bf16.msra.mxu2 %v1801_v3  ;;  %v1808_v43 = vld [vmem:[%s2387_s1 + $0x58] sm:$0xff]  ;;  %v447_v47 = vpack.c.bf16 %v391_v41, %v384_v40  ;;  %v300_v48 = vld [vmem:[%s1971_s21 + $0x70] sm:$0xff]  ;;  %v307_v49 = vld [vmem:[%s1971_s21 + $0xa8] sm:$0xff] }
  0x19   : > { %1863 = vmatpush.bf16.msra.mxu3 %v1801_v3  ;;  %878 = vmatpush.bf16.msra.mxu0 %v1801_v3  ;;  %v1824_v44 = vld [vmem:[%s2387_s1 + $0xd8] sm:$0xff]  ;;  %v1815_v50 = vld [vmem:[%s2387_s1 + $0x90] sm:$0xff]  ;;  %v405_v54 = vpack.c.bf16 %v307_v49, %v300_v48  ;;  %v1814_v55 = vld [vmem:[%s2387_s1 + $0x88] sm:$0xff] }
  0x1a   : > { %v1832_v51 = vld [vmem:[%s2387_s1 + $0x118] sm:$0xff]  ;;  %v1807_v52 = vld [vmem:[%s2387_s1 + $0x50] sm:$0xff]  ;;  %v1806_v57 = vld [vmem:[%s2387_s1 + $0x48] sm:$0xff] }
  0x1b   : > { %v1823_v53 = vld [vmem:[%s2387_s1 + $0xd0] sm:$0xff]  ;;  %v1822_v58 = vld [vmem:[%s2387_s1 + $0xc8] sm:$0xff]  ;;  %v1813_v59 = vld [vmem:[%s2387_s1 + $0x80] sm:$0xff] }
  0x1c   : > { %1864 = vmatpush.bf16.msra.mxu1 %v1800_v4  ;;  %1865 = vmatpush.bf16.msra.mxu2 %v1800_v4  ;;  %v1831_v56 = vld [vmem:[%s2387_s1 + $0x110] sm:$0xff]  ;;  %v1830_v60 = vld [vmem:[%s2387_s1 + $0x108] sm:$0xff]  ;;  %v1805_v61 = vld [vmem:[%s2387_s1 + $0x40] sm:$0xff] }
  0x1d   : > { %1866 = vmatpush.bf16.msra.mxu3 %v1800_v4  ;;  %879 = vmatpush.bf16.msra.mxu0 %v1800_v4  ;;  %v1821_v62 = vld [vmem:[%s2387_s1 + $0xc0] sm:$0xff]  ;;  %v287_v63 = vld [vmem:[%s1971_s21 + $0x8] sm:$0xff]  ;;  %v1844_v1 = vld [vmem:[%s2387_s1 + $0x178] sm:$0xff] }
  0x1e   : > { %v1845_v0 = vld [vmem:[%s2387_s1 + $0x180] sm:$0xff]  ;;  %v288_v3 = vld [vmem:[%s1971_s21 + $0x10] sm:$0xff]  ;;  %v295_v4 = vld [vmem:[%s1971_s21 + $0x48] sm:$0xff] }
  0x1f   : > { %v294_v2 = vld [vmem:[%s1971_s21 + $0x40] sm:$0xff]  ;;  %v400_v9 = vpack.c.bf16 %v295_v4, %v288_v3  ;;  %v1843_v13 = vld [vmem:[%s2387_s1 + $0x170] sm:$0xff]  ;;  %v303_v20 = vld [vmem:[%s1971_s21 + $0x88] sm:$0xff] }
  0x20   : > { %1867 = vmatpush.bf16.msra.mxu1 %v1799_v5  ;;  %1868 = vmatpush.bf16.msra.mxu2 %v1799_v5  ;;  %v399_v8 = vpack.c.bf16 %v294_v2, %v287_v63  ;;  %v290_v11 = vld [vmem:[%s1971_s21 + $0x20] sm:$0xff]  ;;  %v1840_v41 = vld [vmem:[%s2387_s1 + $0x158] sm:$0xff]  ;;  %v1838_v3 = vld [vmem:[%s2387_s1 + $0x148] sm:$0xff] }
  0x21   : > { %1869 = vmatpush.bf16.msra.mxu3 %v1799_v5  ;;  %880 = vmatpush.bf16.msra.mxu0 %v1799_v5  ;;  %v289_v5 = vld [vmem:[%s1971_s21 + $0x18] sm:$0xff]  ;;  %v310_v21 = vld [vmem:[%s1971_s21 + $0xc0] sm:$0xff] }
  0x22   : > { %v318_v38 = vld [vmem:[%s1971_s21 + $0x100] sm:$0xff]  ;;  %v357_v4 = vld [vmem:[%s1971_s21 + $0x238] sm:$0xff] }
  0x24   : > { %1870 = vmatpush.bf16.msra.mxu1 %v1798_v6  ;;  %1871 = vmatpush.bf16.msra.mxu2 %v1798_v6 }
  0x25   : > { %1872 = vmatpush.bf16.msra.mxu3 %v1798_v6  ;;  %881 = vmatpush.bf16.msra.mxu0 %v1798_v6  ;;  %v296_v6 = vld [vmem:[%s1971_s21 + $0x50] sm:$0xff] }
  0x26   : > { %v401_v10 = vpack.c.bf16 %v296_v6, %v289_v5  ;;  %v364_v5 = vld [vmem:[%s1971_s21 + $0x270] sm:$0xff]  ;;  %v358_v6 = vld [vmem:[%s1971_s21 + $0x240] sm:$0xff] }
  0x28   : > { %1873 = vmatpush.bf16.msra.mxu1 %v1797_v7  ;;  %1874 = vmatpush.bf16.msra.mxu2 %v1797_v7 }
  0x29   : > { %1875 = vmatpush.bf16.msra.mxu3 %v1797_v7  ;;  %882 = vmatpush.bf16.msra.mxu0 %v1797_v7  ;;  %v1829_v7 = vld [vmem:[%s2387_s1 + $0x100] sm:$0xff] }
  0x2b   : > { %893 = vmatmul.bf16.vlgmr.msra.gmra.mxu1 %v412_v17  ;;  %903 = vmatmul.bf16.vlgmr.msra.gmra.mxu2 %v426_v18  ;;  %v308_v17 = vld [vmem:[%s1971_s21 + $0xb0] sm:$0xff]  ;;  %v302_v18 = vld [vmem:[%s1971_s21 + $0x80] sm:$0xff] }
  0x2c   : > { %973 = vmatpush.bf16.msrb.mxu2 %v1820_v12  ;;  %924 = vmatpush.bf16.msrb.mxu1 %v1812_v15  ;;  %v297_v12 = vld [vmem:[%s1971_s21 + $0x58] sm:$0xff]  ;;  %v1842_v15 = vld [vmem:[%s2387_s1 + $0x168] sm:$0xff] }
  0x2d   : > { %1022 = vmatpush.bf16.msrb.mxu3 %v1828_v16  ;;  %1071 = vmatpush.bf16.msrb.mxu0 %v1836_v23  ;;  %v402_v14 = vpack.c.bf16 %v297_v12, %v290_v11  ;;  %v301_v16 = vld [vmem:[%s1971_s21 + $0x78] sm:$0xff] }
  0x2e   : > { %913 = vmatmul.bf16.vlgmr.msra.gmra.mxu3 %v440_v19  ;;  %883 = vmatmul.bf16.vlgmr.msra.gmra.mxu0 %v398_v26  ;;  %v309_v19 = vld [vmem:[%s1971_s21 + $0xb8] sm:$0xff]  ;;  %v311_v26 = vld [vmem:[%s1971_s21 + $0xc8] sm:$0xff] }
  0x2f   : > { %v407_v23 = vpack.c.bf16 %v309_v19, %v302_v18  ;;  %v378_v18 = vld [vmem:[%s1971_s21 + $0x2e0] sm:$0xff]  ;;  %v372_v19 = vld [vmem:[%s1971_s21 + $0x2b0] sm:$0xff] }
  0x30   : > { %974 = vmatpush.bf16.msrb.mxu2 %v1819_v22  ;;  %925 = vmatpush.bf16.msrb.mxu1 %v1811_v24  ;;  %v406_v22 = vpack.c.bf16 %v308_v17, %v301_v16  ;;  %v408_v24 = vpack.c.bf16 %v310_v21, %v303_v20  ;;  %v1837_v16 = vld [vmem:[%s2387_s1 + $0x140] sm:$0xff]  ;;  %v371_v17 = vld [vmem:[%s1971_s21 + $0x2a8] sm:$0xff]  ;;  %v373_v21 = vld [vmem:[%s1971_s21 + $0x2b8] sm:$0xff] }
  0x31   : > { %1023 = vmatpush.bf16.msrb.mxu3 %v1827_v25  ;;  %1072 = vmatpush.bf16.msrb.mxu0 %v1835_v28  ;;  %v304_v25 = vld [vmem:[%s1971_s21 + $0x90] sm:$0xff]  ;;  %v1841_v28 = vld [vmem:[%s2387_s1 + $0x160] sm:$0xff]  ;;  %v379_v20 = vld [vmem:[%s1971_s21 + $0x2e8] sm:$0xff] }
  0x34   : > { %975 = vmatpush.bf16.msrb.mxu2 %v1818_v27  ;;  %926 = vmatpush.bf16.msrb.mxu1 %v1810_v29  ;;  %v409_v27 = vpack.c.bf16 %v311_v26, %v304_v25  ;;  %v315_v29 = vld [vmem:[%s1971_s21 + $0xe8] sm:$0xff] }
  0x35   : > { %1024 = vmatpush.bf16.msrb.mxu3 %v1826_v30  ;;  %1073 = vmatpush.bf16.msrb.mxu0 %v1834_v32  ;;  %v322_v30 = vld [vmem:[%s1971_s21 + $0x120] sm:$0xff]  ;;  %v323_v32 = vld [vmem:[%s1971_s21 + $0x128] sm:$0xff] }
  0x36   : > { %v413_v35 = vpack.c.bf16 %v322_v30, %v315_v29  ;;  %v2176_v30 = vld [vmem:[%s2388_s2] ss:$0 sm:$0xff] }
  0x38   : > { %976 = vmatpush.bf16.msrb.mxu2 %v1817_v31  ;;  %927 = vmatpush.bf16.msrb.mxu1 %v1809_v33  ;;  %v316_v31 = vld [vmem:[%s1971_s21 + $0xf0] sm:$0xff]  ;;  %v317_v33 = vld [vmem:[%s1971_s21 + $0xf8] sm:$0xff] }
  0x39   : > { %1025 = vmatpush.bf16.msrb.mxu3 %v1825_v34  ;;  %1074 = vmatpush.bf16.msrb.mxu0 %v1833_v42  ;;  %v324_v34 = vld [vmem:[%s1971_s21 + $0x130] sm:$0xff]  ;;  %v414_v36 = vpack.c.bf16 %v323_v32, %v316_v31  ;;  %v329_v42 = vld [vmem:[%s1971_s21 + $0x158] sm:$0xff] }
  0x3a   : > { %v415_v37 = vpack.c.bf16 %v324_v34, %v317_v33 }
  0x3b   : > { %898 = vmatmul.bf16.gmra.mxu1 %v419_v45  ;;  %908 = vmatmul.bf16.gmra.mxu2 %v433_v46  ;;  %v337_v45 = vld [vmem:[%s1971_s21 + $0x198] sm:$0xff]  ;;  %v331_v46 = vld [vmem:[%s1971_s21 + $0x168] sm:$0xff] }
  0x3c   : > { %977 = vmatpush.bf16.msrb.mxu2 %v1816_v39  ;;  %928 = vmatpush.bf16.msrb.mxu1 %v1808_v43  ;;  %v325_v39 = vld [vmem:[%s1971_s21 + $0x138] sm:$0xff]  ;;  %v336_v43 = vld [vmem:[%s1971_s21 + $0x190] sm:$0xff] }
  0x3d   : > { %1026 = vmatpush.bf16.msrb.mxu3 %v1824_v44  ;;  %1075 = vmatpush.bf16.msrb.mxu0 %v1832_v51  ;;  %v416_v40 = vpack.c.bf16 %v325_v39, %v318_v38  ;;  %v330_v44 = vld [vmem:[%s1971_s21 + $0x160] sm:$0xff]  ;;  %v420_v48 = vpack.c.bf16 %v336_v43, %v329_v42  ;;  %v332_v51 = vld [vmem:[%s1971_s21 + $0x170] sm:$0xff]  ;;  %v393_v39 = vld [vmem:[%s1971_s21 + $0x358] sm:$0xff] }
  0x3e   : > { %918 = vmatmul.bf16.gmra.mxu3 %v447_v47  ;;  %888 = vmatmul.bf16.gmra.mxu0 %v405_v54  ;;  %v338_v47 = vld [vmem:[%s1971_s21 + $0x1a0] sm:$0xff]  ;;  %v421_v49 = vpack.c.bf16 %v337_v45, %v330_v44  ;;  %v1839_v54 = vld [vmem:[%s2387_s1 + $0x150] sm:$0xff] }
  0x3f   : > { %v386_v38 = vld [vmem:[%s1971_s21 + $0x320] sm:$0xff] }
  0x40   : > { %978 = vmatpush.bf16.msrb.mxu2 %v1815_v50  ;;  %929 = vmatpush.bf16.msrb.mxu1 %v1807_v52  ;;  %v422_v50 = vpack.c.bf16 %v338_v47, %v331_v46  ;;  %v339_v52 = vld [vmem:[%s1971_s21 + $0x1a8] sm:$0xff]  ;;  %v449_v46 = vpack.c.bf16 %v393_v39, %v386_v38 }
  0x41   : > { %1027 = vmatpush.bf16.msrb.mxu3 %v1823_v53  ;;  %1076 = vmatpush.bf16.msrb.mxu0 %v1831_v56  ;;  %v423_v53 = vpack.c.bf16 %v339_v52, %v332_v51  ;;  %v350_v56 = vld [vmem:[%s1971_s21 + $0x200] sm:$0xff]  ;;  %v1849_v52 = vld [vmem:[%s2389_s3 + $0x18] sm:$0xff]  ;;  %v327_v38 = vld [vmem:[%s1971_s21 + $0x148] sm:$0xff] }
  0x44   : > { %979 = vmatpush.bf16.msrb.mxu2 %v1814_v55  ;;  %930 = vmatpush.bf16.msrb.mxu1 %v1806_v57  ;;  %v343_v55 = vld [vmem:[%s1971_s21 + $0x1c8] sm:$0xff]  ;;  %v344_v57 = vld [vmem:[%s1971_s21 + $0x1d0] sm:$0xff] }
  0x45   : > { %1028 = vmatpush.bf16.msrb.mxu3 %v1822_v58  ;;  %1077 = vmatpush.bf16.msrb.mxu0 %v1830_v60  ;;  %v351_v58 = vld [vmem:[%s1971_s21 + $0x208] sm:$0xff]  ;;  %v352_v60 = vld [vmem:[%s1971_s21 + $0x210] sm:$0xff] }
  0x48   : > { %980 = vmatpush.bf16.msrb.mxu2 %v1813_v59  ;;  %931 = vmatpush.bf16.msrb.mxu1 %v1805_v61  ;;  %v345_v59 = vld [vmem:[%s1971_s21 + $0x1d8] sm:$0xff]  ;;  %v427_v61 = vpack.c.bf16 %v350_v56, %v343_v55 }
  0x49   : > { %1029 = vmatpush.bf16.msrb.mxu3 %v1821_v62  ;;  %1078 = vmatpush.bf16.msrb.mxu0 %v1829_v7  ;;  %v428_v62 = vpack.c.bf16 %v351_v58, %v344_v57  ;;  %v429_v63 = vpack.c.bf16 %v352_v60, %v345_v59  ;;  %v365_v7 = vld [vmem:[%s1971_s21 + $0x278] sm:$0xff]  ;;  %v291_v59 = vld [vmem:[%s1971_s21 + $0x28] sm:$0xff]  ;;  %v298_v60 = vld [vmem:[%s1971_s21 + $0x60] sm:$0xff] }
  0x4a   : > { %v435_v11 = vpack.c.bf16 %v365_v7, %v358_v6 }
  0x4b   : > { %932 = vmatmul.bf16.vlgmr.msrb.gmra.mxu1 %v399_v8  ;;  %981 = vmatmul.bf16.vlgmr.msrb.gmra.mxu2 %v400_v9  ;;  %v359_v8 = vld [vmem:[%s1971_s21 + $0x248] sm:$0xff]  ;;  %v366_v9 = vld [vmem:[%s1971_s21 + $0x280] sm:$0xff] }
  0x4c   : > { %1176 = vmatpush.bf16.msra.mxu2 %v1845_v0  ;;  %1120 = vmatpush.bf16.msra.mxu1 %v1844_v1  ;;  %v346_v0 = vld [vmem:[%s1971_s21 + $0x1e0] sm:$0xff]  ;;  %v353_v1 = vld [vmem:[%s1971_s21 + $0x218] sm:$0xff]  ;;  %v436_v12 = vpack.c.bf16 %v366_v9, %v359_v8 }
  0x4d   : > { %v430_v2 = vpack.c.bf16 %v353_v1, %v346_v0  ;;  %1307 = vmatpush.bf16.msra.mxu3 %v1849_v52 }
  0x4e   : > { %1030 = vmatmul.bf16.vlgmr.msrb.gmra.mxu3 %v401_v10  ;;  %1079 = vmatmul.bf16.vlgmr.msrb.gmra.mxu0 %v402_v14  ;;  %v434_v10 = vpack.c.bf16 %v364_v5, %v357_v4  ;;  %v367_v14 = vld [vmem:[%s1971_s21 + $0x288] sm:$0xff] }
  0x50   : > { %1121 = vmatpush.bf16.msra.mxu1 %v1843_v13  ;;  %v360_v13 = vld [vmem:[%s1971_s21 + $0x250] sm:$0xff] }
  0x54   : > { %1122 = vmatpush.bf16.msra.mxu1 %v1842_v15  ;;  %v437_v15 = vpack.c.bf16 %v367_v14, %v360_v13  ;;  %v306_v13 = vld [vmem:[%s1971_s21 + $0xa0] sm:$0xff]  ;;  %v313_v14 = vld [vmem:[%s1971_s21 + $0xd8] sm:$0xff] }
  0x58   : > { %1123 = vmatpush.bf16.msra.mxu1 %v1841_v28  ;;  %v381_v28 = vld [vmem:[%s1971_s21 + $0x2f8] sm:$0xff] }
  0x5b   : > { %937 = vmatmul.bf16.gmra.mxu1 %v406_v22  ;;  %986 = vmatmul.bf16.gmra.mxu2 %v407_v23  ;;  %v380_v22 = vld [vmem:[%s1971_s21 + $0x2f0] sm:$0xff]  ;;  %v441_v23 = vpack.c.bf16 %v378_v18, %v371_v17 }
  0x5c   : > { %1124 = vmatpush.bf16.msra.mxu1 %v1840_v41  ;;  %v443_v26 = vpack.c.bf16 %v380_v22, %v373_v21  ;;  %v394_v41 = vld [vmem:[%s1971_s21 + $0x360] sm:$0xff]  ;;  %v411_v21 = vpack.c.bf16 %v313_v14, %v306_v13  ;;  %v355_v13 = vld [vmem:[%s1971_s21 + $0x228] sm:$0xff] }
  0x5e   : > { %1035 = vmatmul.bf16.gmra.mxu3 %v408_v24  ;;  %1084 = vmatmul.bf16.gmra.mxu0 %v409_v27  ;;  %v442_v24 = vpack.c.bf16 %v379_v20, %v372_v19  ;;  %v374_v27 = vld [vmem:[%s1971_s21 + $0x2c0] sm:$0xff] }
  0x5f   : > { %v444_v29 = vpack.c.bf16 %v381_v28, %v374_v27 }
  0x60   : > { %1125 = vmatpush.bf16.msra.mxu1 %v1839_v54 }
  0x64   : > { %1126 = vmatpush.bf16.msra.mxu1 %v1838_v3 }
  0x68   : > { %1127 = vmatpush.bf16.msra.mxu1 %v1837_v16 }
  0x6b   : > { %942 = vmatmul.bf16.gmra.mxu1 %v413_v35  ;;  %991 = vmatmul.bf16.gmra.mxu2 %v414_v36  ;;  %v385_v36 = vld [vmem:[%s1971_s21 + $0x318] sm:$0xff] }
  0x6e   : > { %1040 = vmatmul.bf16.gmra.mxu3 %v415_v37  ;;  %1089 = vmatmul.bf16.gmra.mxu0 %v416_v40  ;;  %v392_v37 = vld [vmem:[%s1971_s21 + $0x350] sm:$0xff]  ;;  %v387_v40 = vld [vmem:[%s1971_s21 + $0x328] sm:$0xff] }
  0x6f   : > { %v448_v45 = vpack.c.bf16 %v392_v37, %v385_v36  ;;  %v326_v36 = vld [vmem:[%s1971_s21 + $0x140] sm:$0xff]  ;;  %v320_v37 = vld [vmem:[%s1971_s21 + $0x110] sm:$0xff] }
  0x7b   : > { %947 = vmatmul.bf16.gmra.mxu1 %v420_v48  ;;  %996 = vmatmul.bf16.gmra.mxu2 %v421_v49  ;;  %v450_v48 = vpack.c.bf16 %v394_v41, %v387_v40  ;;  %v388_v49 = vld [vmem:[%s1971_s21 + $0x330] sm:$0xff] }
  0x7e   : > { %1045 = vmatmul.bf16.gmra.mxu3 %v422_v50  ;;  %1094 = vmatmul.bf16.gmra.mxu0 %v423_v53  ;;  %v395_v50 = vld [vmem:[%s1971_s21 + $0x368] sm:$0xff] }
  0x7f   : > { %v451_v51 = vpack.c.bf16 %v395_v50, %v388_v49 }
  0x8b   : > { %952 = vmatmul.bf16.gmra.mxu1 %v427_v61  ;;  %1001 = vmatmul.bf16.gmra.mxu2 %v428_v62  ;;  %v292_v61 = vld [vmem:[%s1971_s21 + $0x30] sm:$0xff]  ;;  %v299_v62 = vld [vmem:[%s1971_s21 + $0x68] sm:$0xff] }
  0x8c   : > { %v404_v3 = vpack.c.bf16 %v299_v62, %v292_v61 }
  0x8e   : > { %1050 = vmatmul.bf16.gmra.mxu3 %v429_v63  ;;  %1099 = vmatmul.bf16.gmra.mxu0 %v430_v2  ;;  %v403_v2 = vpack.c.bf16 %v298_v60, %v291_v59  ;;  %v334_v59 = vld [vmem:[%s1971_s21 + $0x180] sm:$0xff]  ;;  %v341_v60 = vld [vmem:[%s1971_s21 + $0x1b8] sm:$0xff] }
  0x9b   : > { %957 = vmatmul.bf16.gmra.mxu1 %v434_v10  ;;  %1006 = vmatmul.bf16.gmra.mxu2 %v435_v11  ;;  %v305_v11 = vld [vmem:[%s1971_s21 + $0x98] sm:$0xff] }
  0x9e   : > { %1055 = vmatmul.bf16.gmra.mxu3 %v436_v12  ;;  %1104 = vmatmul.bf16.gmra.mxu0 %v437_v15  ;;  %v312_v12 = vld [vmem:[%s1971_s21 + $0xd0] sm:$0xff] }
  0x9f   : > { %v410_v20 = vpack.c.bf16 %v312_v12, %v305_v11  ;;  %v354_v11 = vld [vmem:[%s1971_s21 + $0x220] sm:$0xff]  ;;  %v348_v12 = vld [vmem:[%s1971_s21 + $0x1f0] sm:$0xff] }
  0xa8   : > { %v2169_v25 = vpop.f32.mrf.mxu1 }
  0xa9   : > { %v895_v41 = vadd.f32 %v2176_v30, %v2169_v25  ;;  %v340_v25 = vld [vmem:[%s1971_s21 + $0x1b0] sm:$0xff] }
  0xab   : > { %962 = vmatmul.bf16.gmra.mxu1 %v441_v23  ;;  %1011 = vmatmul.bf16.gmra.mxu2 %v442_v24  ;;  %v884_v58 = vpop.f32.mrf.mxu0  ;;  %v1848_v24 = vld [vmem:[%s2389_s3 + $0x10] sm:$0xff] }
  0xac   : > { %v885_v0 = vadd.f32 %v2176_v30, %v884_v58  ;;  %1308 = vmatpush.bf16.msra.mxu3 %v1848_v24  ;;  %v333_v58 = vld [vmem:[%s1971_s21 + $0x178] sm:$0xff] }
  0xad   : > { %v361_v24 = vld [vmem:[%s1971_s21 + $0x258] sm:$0xff] }
  0xae   : > { %1060 = vmatmul.bf16.gmra.mxu3 %v443_v26  ;;  %v904_v31 = vpop.f32.mrf.mxu2  ;;  %1109 = vmatmul.bf16.gmra.mxu0 %v444_v29 }
  0xaf   : > { %v2179_v32 = vadd.f32 %v2176_v30, %v904_v31 }
  0xb0   : > { %v2181_v34 = vpop.f32.mrf.mxu1 }
  0xb1   : > { %v914_v33 = vpop.f32.mrf.mxu3 }
  0xb2   : > { %v2184_v35 = vadd.f32 %v2176_v30, %v914_v33  ;;  %v319_v33 = vld [vmem:[%s1971_s21 + $0x108] sm:$0xff] }
  0xb3   : > { %v886_v6 = vpop.f32.mrf.mxu0 }
  0xb4   : > { %v887_v10 = vadd.f32 %v2176_v30, %v886_v6 }
  0xb6   : > { %v906_v42 = vpop.f32.mrf.mxu2 }
  0xb7   : > { %v2193_v43 = vadd.f32 %v2176_v30, %v906_v42 }
  0xb8   : > { %v2197_v47 = vpop.f32.mrf.mxu1 }
  0xb9   : > { %v2195_v44 = vpop.f32.mrf.mxu3  ;;  %v900_v62 = vadd.f32 %v2176_v30, %v2197_v47 }
  0xbb   : > { %967 = vmatmul.bf16.gmra.mxu1 %v448_v45  ;;  %1016 = vmatmul.bf16.gmra.mxu2 %v449_v46  ;;  %v889_v16 = vpop.f32.mrf.mxu0  ;;  %v417_v45 = vpack.c.bf16 %v326_v36, %v319_v33  ;;  %v418_v46 = vpack.c.bf16 %v327_v38, %v320_v37 }
  0xbc   : > { %v890_v18 = vadd.f32 %v2176_v30, %v889_v16 }
  0xbe   : > { %1065 = vmatmul.bf16.gmra.mxu3 %v450_v48  ;;  %v909_v53 = vpop.f32.mrf.mxu2  ;;  %1114 = vmatmul.bf16.gmra.mxu0 %v451_v51  ;;  %v897_v51 = vadd.f32 %v2176_v30, %v2181_v34  ;;  %v425_v34 = vpack.c.bf16 %v341_v60, %v334_v59 }
  0xbf   : > { %v2205_v54 = vadd.f32 %v2176_v30, %v909_v53 }
  0xc0   : > { %v2207_v56 = vpop.f32.mrf.mxu1 }
  0xc1   : > { %v919_v55 = vpop.f32.mrf.mxu3  ;;  %v902_v47 = vadd.f32 %v2176_v30, %v2207_v56 }
  0xc2   : > { %v2210_v57 = vadd.f32 %v2176_v30, %v919_v55 }
  0xc3   : > { %v891_v28 = vpop.f32.mrf.mxu0 }
  0xc4   : > { %v892_v31 = vadd.f32 %v2176_v30, %v891_v28  ;;  %v362_v28 = vld [vmem:[%s1971_s21 + $0x260] sm:$0xff] }
  0xc6   : > { %v911_v63 = vpop.f32.mrf.mxu2 }
  0xc7   : > { %v2218_v1 = vadd.f32 %v2176_v30, %v911_v63 }
  0xc8   : > { %v933_v4 = vpop.f32.mrf.mxu1 }
  0xc9   : > { %v934_v5 = vadd.f32 %v933_v4, %v885_v0  ;;  %v424_v0 = vpack.c.bf16 %v340_v25, %v333_v58  ;;  %v1847_v4 = vld [vmem:[%s2389_s3 + $0x8] sm:$0xff] }
  0xca   : > { %1309 = vmatpush.bf16.msra.mxu3 %v1847_v4  ;;  %v389_v4 = vld [vmem:[%s1971_s21 + $0x338] sm:$0xff] }
  0xcb   : > { %1128 = vmatmul.bf16.vlgmr.msra.gmra.mxu1 %v403_v2  ;;  %1747 = vmatmul.msk.bf16.vlgmr.msra.gmra.mxu2 %vm850_vm0, %v404_v3 }
  0xce   : > { %v982_v7 = vpop.f32.mrf.mxu2 }
  0xcf   : > { %v2221_v8 = vadd.f32 %v982_v7, %v934_v5 }
  0xd0   : > { %v935_v9 = vpop.f32.mrf.mxu1 }
  0xd1   : > { %v936_v15 = vadd.f32 %v935_v9, %v887_v10  ;;  %v347_v10 = vld [vmem:[%s1971_s21 + $0x1e8] sm:$0xff] }
  0xd2   : > { %v431_v16 = vpack.c.bf16 %v354_v11, %v347_v10 }
  0xd6   : > { %v984_v17 = vpop.f32.mrf.mxu2 }
  0xd7   : > { %v2229_v19 = vadd.f32 %v984_v17, %v936_v15  ;;  %v432_v17 = vpack.c.bf16 %v355_v13, %v348_v12 }
  0xd8   : > { %v938_v22 = vpop.f32.mrf.mxu1 }
  0xd9   : > { %v939_v23 = vadd.f32 %v938_v22, %v890_v18 }
  0xdb   : > { %1133 = vmatmul.bf16.gmra.mxu1 %v410_v20  ;;  %1748 = vmatmul.msk.bf16.gmra.mxu2 %vm850_vm0, %v411_v21 }
  0xde   : > { %v987_v26 = vpop.f32.mrf.mxu2 }
  0xdf   : > { %v2235_v27 = vadd.f32 %v987_v26, %v939_v23  ;;  %v368_v26 = vld [vmem:[%s1971_s21 + $0x290] sm:$0xff] }
  0xe0   : > { %v940_v29 = vpop.f32.mrf.mxu1 }
  0xe1   : > { %v941_v39 = vadd.f32 %v940_v29, %v892_v31  ;;  %v369_v29 = vld [vmem:[%s1971_s21 + $0x298] sm:$0xff] }
  0xe2   : > { %v439_v36 = vpack.c.bf16 %v369_v29, %v362_v28 }
  0xe6   : > { %v989_v40 = vpop.f32.mrf.mxu2 }
  0xe7   : > { %v2244_v42 = vadd.f32 %v989_v40, %v941_v39  ;;  %v921_v39 = vpop.f32.mrf.mxu3 }
  0xe8   : > { %v943_v48 = vpop.f32.mrf.mxu1 }
  0xe9   : > { %v944_v49 = vadd.f32 %v943_v48, %v895_v41  ;;  %v375_v48 = vld [vmem:[%s1971_s21 + $0x2c8] sm:$0xff] }
  0xeb   : > { %1138 = vmatmul.bf16.gmra.mxu1 %v417_v45  ;;  %1749 = vmatmul.msk.bf16.gmra.mxu2 %vm850_vm0, %v418_v46 }
  0xee   : > { %v992_v50 = vpop.f32.mrf.mxu2 }
  0xef   : > { %v2249_v52 = vadd.f32 %v992_v50, %v944_v49  ;;  %v382_v49 = vld [vmem:[%s1971_s21 + $0x300] sm:$0xff]  ;;  %v376_v50 = vld [vmem:[%s1971_s21 + $0x2d0] sm:$0xff] }
  0xf0   : > { %v945_v53 = vpop.f32.mrf.mxu1  ;;  %v445_v58 = vpack.c.bf16 %v382_v49, %v375_v48 }
  0xf1   : > { %v946_v55 = vadd.f32 %v945_v53, %v897_v51  ;;  %v383_v51 = vld [vmem:[%s1971_s21 + $0x308] sm:$0xff] }
  0xf2   : > { %v446_v25 = vpack.c.bf16 %v383_v51, %v376_v50 }
  0xf6   : > { %v994_v61 = vpop.f32.mrf.mxu2 }
  0xf7   : > { %v2257_v63 = vadd.f32 %v994_v61, %v946_v55  ;;  %v1080_v61 = vpop.f32.mrf.mxu0 }
  0xf8   : > { %v948_v2 = vpop.f32.mrf.mxu1 }
  0xf9   : > { %v949_v3 = vadd.f32 %v948_v2, %v900_v62  ;;  %v917_v62 = vadd.f32 %v2176_v30, %v2195_v44 }
  0xfb   : > { %1143 = vmatmul.bf16.gmra.mxu1 %v424_v0  ;;  %1750 = vmatmul.msk.bf16.gmra.mxu2 %vm850_vm0, %v425_v34 }
  0xfe   : > { %v997_v5 = vpop.f32.mrf.mxu2 }
  0xff   : > { %v2265_v6 = vadd.f32 %v997_v5, %v949_v3  ;;  %v1082_v5 = vpop.f32.mrf.mxu0 }
 0x100   : > { %v950_v7 = vpop.f32.mrf.mxu1 }
 0x101   : > { %v951_v9 = vadd.f32 %v950_v7, %v902_v47  ;;  %v396_v47 = vld [vmem:[%s1971_s21 + $0x370] sm:$0xff]  ;;  %v390_v7 = vld [vmem:[%s1971_s21 + $0x340] sm:$0xff] }
 0x102   : > { %v452_v11 = vpack.c.bf16 %v396_v47, %v389_v4 }
 0x106   : > { %v999_v14 = vpop.f32.mrf.mxu2 }
 0x107   : > { %v2271_v15 = vadd.f32 %v999_v14, %v951_v9  ;;  %v397_v9 = vld [vmem:[%s1971_s21 + $0x378] sm:$0xff]  ;;  %v1085_v44 = vpop.f32.mrf.mxu0 }
 0x108   : > { %v953_v18 = vpop.f32.mrf.mxu1  ;;  %v453_v12 = vpack.c.bf16 %v397_v9, %v390_v7 }
 0x109   : > { %v954_v56 = vadd.f32 %v953_v18, %v2179_v32  ;;  %v438_v32 = vpack.c.bf16 %v368_v26, %v361_v24  ;;  %v922_v18 = vadd.f32 %v2176_v30, %v921_v39  ;;  %v1851_v30 = vld [vmem:[%s2391_s5 + $0x8] sm:$0xff] }
 0x10a   : > { %1427 = vmatpush.bf16.msra.mxu0 %v1851_v30 }
 0x10b   : > { %1148 = vmatmul.bf16.gmra.mxu1 %v431_v16  ;;  %1751 = vmatmul.msk.bf16.gmra.mxu2 %vm850_vm0, %v432_v17 }
 0x10e   : > { %v1002_v20 = vpop.f32.mrf.mxu2 }
 0x10f   : > { %v2275_v21 = vadd.f32 %v1002_v20, %v954_v56  ;;  %v1087_v28 = vpop.f32.mrf.mxu0 }
 0x110   : > { %v955_v22 = vpop.f32.mrf.mxu1 }
 0x111   : > { %v956_v23 = vadd.f32 %v955_v22, %v2193_v43  ;;  %v1846_v43 = vld [vmem:[%s2389_s3] sm:$0xff] }
 0x112   : > { %1310 = vmatpush.bf16.msra.mxu3 %v1846_v43 }
 0x116   : > { %v1004_v31 = vpop.f32.mrf.mxu2 }
 0x117   : > { %v2282_v33 = vadd.f32 %v1004_v31, %v956_v23  ;;  %v1090_v43 = vpop.f32.mrf.mxu0 }
 0x118   : > { %v958_v37 = vpop.f32.mrf.mxu1 }
 0x119   : > { %v959_v38 = vadd.f32 %v958_v37, %v2205_v54  ;;  %v1031_v54 = vpop.f32.mrf.mxu3 }
 0x11b   : > { %1153 = vmatmul.bf16.gmra.mxu1 %v438_v32  ;;  %1752 = vmatmul.msk.bf16.gmra.mxu2 %vm850_vm0, %v439_v36 }
 0x11e   : > { %v1007_v40 = vpop.f32.mrf.mxu2 }
 0x11f   : > { %v2289_v41 = vadd.f32 %v1007_v40, %v959_v38 }
 0x120   : > { %v960_v45 = vpop.f32.mrf.mxu1 }
 0x121   : > { %v961_v46 = vadd.f32 %v960_v45, %v2218_v1  ;;  %v1033_v34 = vpop.f32.mrf.mxu3 }
 0x122   : > { %v1034_v36 = vadd.f32 %v1033_v34, %v2229_v19 }
 0x124   : > { %v1083_v39 = vadd.f32 %v1082_v5, %v1034_v36 }
 0x126   : > { %v1009_v53 = vpop.f32.mrf.mxu2 }
 0x127   : > { %v2296_v55 = vadd.f32 %v1009_v53, %v961_v46  ;;  %v1092_v53 = vpop.f32.mrf.mxu0 }
 0x128   : > { %v963_v59 = vpop.f32.mrf.mxu1 }
 0x129   : > { %v964_v60 = vadd.f32 %v963_v59, %v2184_v35  ;;  %v1036_v16 = vpop.f32.mrf.mxu3 }
 0x12b   : > { %1158 = vmatmul.bf16.gmra.mxu1 %v445_v58  ;;  %1753 = vmatmul.msk.bf16.gmra.mxu2 %vm850_vm0, %v446_v25  ;;  %v1037_v58 = vadd.f32 %v1036_v16, %v2235_v27 }
 0x12e   : > { %v1012_v1 = vpop.f32.mrf.mxu2 }
 0x12f   : > { %v2302_v0 = vadd.f32 %v1012_v1, %v964_v60  ;;  %v1095_v4 = vpop.f32.mrf.mxu0 }
 0x130   : > { %v965_v2 = vpop.f32.mrf.mxu1 }
 0x131   : > { %v966_v3 = vadd.f32 %v965_v2, %v917_v62  ;;  %v1038_v23 = vpop.f32.mrf.mxu3 }
 0x132   : > { %v1039_v59 = vadd.f32 %v1038_v23, %v2244_v42 }
 0x134   : > { %v1088_v62 = vadd.f32 %v1087_v28, %v1039_v59 }
 0x136   : > { %v1014_v10 = vpop.f32.mrf.mxu2 }
 0x137   : > { %v2308_v35 = vadd.f32 %v1014_v10, %v966_v3 }
 0x138   : > { %v968_v13 = vpop.f32.mrf.mxu1 }
 0x139   : > { %v969_v14 = vadd.f32 %v968_v13, %v2210_v57  ;;  %v1032_v57 = vadd.f32 %v1031_v54, %v2221_v8  ;;  %v1041_v31 = vpop.f32.mrf.mxu3 }
 0x13b   : > { %1163 = vmatmul.bf16.gmra.mxu1 %v452_v11  ;;  %1754 = vmatmul.msk.bf16.gmra.mxu2 %vm850_vm0, %v453_v12  ;;  %v1081_v38 = vadd.f32 %v1080_v61, %v1032_v57  ;;  %v1086_v61 = vadd.f32 %v1085_v44, %v1037_v58  ;;  %v1042_v12 = vadd.f32 %v1041_v31, %v2249_v52 }
 0x13d   : > { %v1091_v44 = vadd.f32 %v1090_v43, %v1042_v12 }
 0x13e   : > { %v1017_v17 = vpop.f32.mrf.mxu2 }
 0x13f   : > { %v2313_v56 = vadd.f32 %v1017_v17, %v969_v14  ;;  %v1097_v14 = vpop.f32.mrf.mxu0 }
 0x140   : > { %v970_v20 = vpop.f32.mrf.mxu1 }
 0x141   : > { %v971_v22 = vadd.f32 %v970_v20, %v922_v18  ;;  %v1043_v50 = vpop.f32.mrf.mxu3 }
 0x142   : > { %v1044_v13 = vadd.f32 %v1043_v50, %v2257_v63 }
 0x144   : > { %v1093_v17 = vadd.f32 %v1092_v53, %v1044_v13 }
 0x146   : > { %v1019_v24 = vpop.f32.mrf.mxu2 }
 0x147   : > { %v2315_v26 = vadd.f32 %v1019_v24, %v971_v22  ;;  %v1100_v36 = vpop.f32.mrf.mxu0 }
 0x148   : > { %v1129_v29 = vpop.f32.mrf.mxu1 }
 0x149   : > { %v1130_v40 = vadd.f32 %v1129_v29, %v1081_v38  ;;  %v1046_v1 = vpop.f32.mrf.mxu3 }
 0x14a   : > { %v1047_v31 = vadd.f32 %v1046_v1, %v2265_v6 }
 0x14c   : > { %v1096_v43 = vadd.f32 %v1095_v4, %v1047_v31 }
 0x14e   : > { %v1178_v32 = vpop.f32.mrf.mxu2 }
 0x14f   : > { %v1179_v45 = vadd.f32 %v1178_v32, %v1130_v40 }
 0x150   : > { %v1131_v37 = vpop.f32.mrf.mxu1 }
 0x151   : > { %v1132_v46 = vadd.f32 %v1131_v37, %v1083_v39  ;;  %v1218_v51 = vmax.f32 %v1179_v45, 0.0  ;;  %v1048_v27 = vpop.f32.mrf.mxu3  ;;  %v1102_v45 = vpop.f32.mrf.mxu0 }
 0x152   : > { %v1049_v37 = vadd.f32 %v1048_v27, %v2271_v15 }
 0x154   : > { %v1098_v39 = vadd.f32 %v1097_v14, %v1049_v37 }
 0x156   : > { %v1180_v48 = vpop.f32.mrf.mxu2 }
 0x157   : > { %v1181_v49 = vadd.f32 %v1180_v48, %v1132_v46 }
 0x158   : > { %v1134_v8 = vpop.f32.mrf.mxu1 }
 0x159   : > { %v1219_v54 = vmax.f32 %v1181_v49, 0.0  ;;  %v1135_v34 = vadd.f32 %v1134_v8, %v1086_v61  ;;  %v1051_v23 = vpop.f32.mrf.mxu3  ;;  %v1105_v15 = vpop.f32.mrf.mxu0  ;;  %v1850_v61 = vld [vmem:[%s2391_s5] sm:$0xff] }
 0x15a   : > { %v1052_v53 = vadd.f32 %v1051_v23, %v2275_v21  ;;  %1428 = vmatpush.bf16.msra.mxu0 %v1850_v61 }
 0x15b   : > { %v1234_v19 = vpack.c.bf16 %v1219_v54, %v1218_v51 }
 0x15d   : > { %1771 = vmatmul.msk.bf16.vlgmr.msra.gmra.mxu3 %vm1278_vm1, %v1234_v19 }
 0x15e   : > { %v1183_v25 = vpop.f32.mrf.mxu2 }
 0x15f   : > { %v1184_v2 = vadd.f32 %v1183_v25, %v1135_v34 }
 0x160   : > { %v1136_v60 = vpop.f32.mrf.mxu1 }
 0x161   : > { %v1137_v3 = vadd.f32 %v1136_v60, %v1088_v62  ;;  %v1220_v9 = vmax.f32 %v1184_v2, 0.0  ;;  %v1053_v38 = vpop.f32.mrf.mxu3  ;;  %v1101_v60 = vadd.f32 %v1100_v36, %v1052_v53 }
 0x162   : > { %v1054_v25 = vadd.f32 %v1053_v38, %v2282_v33 }
 0x164   : > { %v1103_v1 = vadd.f32 %v1102_v45, %v1054_v25 }
 0x166   : > { %v1185_v5 = vpop.f32.mrf.mxu2 }
 0x167   : > { %v1186_v47 = vadd.f32 %v1185_v5, %v1137_v3  ;;  %v1107_v5 = vpop.f32.mrf.mxu0 }
 0x168   : > { %v1139_v7 = vpop.f32.mrf.mxu1 }
 0x169   : > { %v1221_v10 = vmax.f32 %v1186_v47, 0.0  ;;  %v1140_v18 = vadd.f32 %v1139_v7, %v1091_v44  ;;  %v1056_v19 = vpop.f32.mrf.mxu3 }
 0x16a   : > { %v1057_v33 = vadd.f32 %v1056_v19, %v2289_v41 }
 0x16b   : > { %v1235_v11 = vpack.c.bf16 %v1221_v10, %v1220_v9 }
 0x16c   : > { %v1106_v13 = vadd.f32 %v1105_v15, %v1057_v33 }
 0x16d   : > { %1772 = vmatmul.msk.bf16.gmra.mxu3 %vm1278_vm1, %v1235_v11 }
 0x16e   : > { %v1188_v42 = vpop.f32.mrf.mxu2 }
 0x16f   : > { %v1189_v20 = vadd.f32 %v1188_v42, %v1140_v18  ;;  %v1110_v14 = vpop.f32.mrf.mxu0 }
 0x170   : > { %v1141_v16 = vpop.f32.mrf.mxu1 }
 0x171   : > { %v1142_v22 = vadd.f32 %v1141_v16, %v1093_v17  ;;  %v1222_v57 = vmax.f32 %v1189_v20, 0.0  ;;  %v1058_v34 = vpop.f32.mrf.mxu3 }
 0x172   : > { %v1059_v12 = vadd.f32 %v1058_v34, %v2296_v55  ;;  %v1886_v34 = vld [vmem:[%s2390_s4] ss:$0 sm:$0xff] }
 0x174   : > { %v1108_v16 = vadd.f32 %v1107_v5, %v1059_v12 }
 0x176   : > { %v1190_v24 = vpop.f32.mrf.mxu2 }
 0x177   : > { %v1191_v28 = vadd.f32 %v1190_v24, %v1142_v22 }
 0x178   : > { %v1144_v29 = vpop.f32.mrf.mxu1 }
 0x179   : > { %v1223_v32 = vmax.f32 %v1191_v28, 0.0  ;;  %v1145_v40 = vadd.f32 %v1144_v29, %v1096_v43  ;;  %v1061_v11 = vpop.f32.mrf.mxu3 }
 0x17b   : > { %v1236_v52 = vpack.c.bf16 %v1223_v32, %v1222_v57  ;;  %v1112_v57 = vpop.f32.mrf.mxu0  ;;  %v1062_v32 = vadd.f32 %v1061_v11, %v2302_v0 }
 0x17d   : > { %1773 = vmatmul.msk.bf16.gmra.mxu3 %vm1278_vm1, %v1236_v52  ;;  %v1111_v31 = vadd.f32 %v1110_v14, %v1062_v32 }
 0x17e   : > { %v1193_v63 = vpop.f32.mrf.mxu2 }
 0x17f   : > { %v1194_v46 = vadd.f32 %v1193_v63, %v1145_v40 }
 0x180   : > { %v1146_v30 = vpop.f32.mrf.mxu1 }
 0x181   : > { %v1147_v48 = vadd.f32 %v1146_v30, %v1098_v39  ;;  %v1224_v51 = vmax.f32 %v1194_v46, 0.0  ;;  %v1063_v23 = vpop.f32.mrf.mxu3 }
 0x182   : > { %v1064_v36 = vadd.f32 %v1063_v23, %v2308_v35 }
 0x183   : > { %v1115_v39 = vpop.f32.mrf.mxu0 }
 0x184   : > { %v1113_v37 = vadd.f32 %v1112_v57, %v1064_v36 }
 0x186   : > { %v1195_v49 = vpop.f32.mrf.mxu2 }
 0x187   : > { %v1196_v50 = vadd.f32 %v1195_v49, %v1147_v48 }
 0x188   : > { %v1149_v8 = vpop.f32.mrf.mxu1 }
 0x189   : > { %v1225_v54 = vmax.f32 %v1196_v50, 0.0  ;;  %v1150_v62 = vadd.f32 %v1149_v8, %v1101_v60  ;;  %v1066_v63 = vpop.f32.mrf.mxu3 }
 0x18a   : > { %v1067_v8 = vadd.f32 %v1066_v63, %v2313_v56 }
 0x18b   : > { %v1237_v6 = vpack.c.bf16 %v1225_v54, %v1224_v51  ;;  %v1117_v54 = vpop.f32.mrf.mxu0 }
 0x18c   : > { %v1116_v19 = vadd.f32 %v1115_v39, %v1067_v8 }
 0x18d   : > { %1774 = vmatmul.msk.bf16.gmra.mxu3 %vm1278_vm1, %v1237_v6 }
 0x18e   : > { %v1198_v58 = vpop.f32.mrf.mxu2 }
 0x18f   : > { %v1199_v2 = vadd.f32 %v1198_v58, %v1150_v62 }
 0x190   : > { %v1151_v59 = vpop.f32.mrf.mxu1 }
 0x191   : > { %v1152_v3 = vadd.f32 %v1151_v59, %v1103_v1  ;;  %v1226_v7 = vmax.f32 %v1199_v2, 0.0  ;;  %v1068_v0 = vpop.f32.mrf.mxu3 }
 0x192   : > { %v1069_v51 = vadd.f32 %v1068_v0, %v2315_v26 }
 0x194   : > { %v1118_v53 = vadd.f32 %v1117_v54, %v1069_v51 }
 0x196   : > { %v1200_v4 = vpop.f32.mrf.mxu2 }
 0x197   : > { %v1201_v21 = vadd.f32 %v1200_v4, %v1152_v3 }
 0x198   : > { %v1154_v47 = vpop.f32.mrf.mxu1 }
 0x199   : > { %v1227_v9 = vmax.f32 %v1201_v21, 0.0  ;;  %v1155_v44 = vadd.f32 %v1154_v47, %v1106_v13 }
 0x19b   : > { %v1238_v10 = vpack.c.bf16 %v1227_v9, %v1226_v7 }
 0x19d   : > { %1775 = vmatmul.msk.bf16.gmra.mxu3 %vm1278_vm1, %v1238_v10 }
 0x19e   : > { %v1203_v27 = vpop.f32.mrf.mxu2 }
 0x19f   : > { %v1204_v17 = vadd.f32 %v1203_v27, %v1155_v44 }
 0x1a0   : > { %v1156_v42 = vpop.f32.mrf.mxu1 }
 0x1a1   : > { %v1157_v18 = vadd.f32 %v1156_v42, %v1108_v16  ;;  %v1228_v28 = vmax.f32 %v1204_v17, 0.0 }
 0x1a6   : > { %v1205_v20 = vpop.f32.mrf.mxu2 }
 0x1a7   : > { %v1206_v22 = vadd.f32 %v1205_v20, %v1157_v18 }
 0x1a8   : > { %v1159_v24 = vpop.f32.mrf.mxu1 }
 0x1a9   : > { %v1229_v29 = vmax.f32 %v1206_v22, 0.0  ;;  %v1160_v38 = vadd.f32 %v1159_v24, %v1111_v31 }
 0x1ab   : > { %v1239_v41 = vpack.c.bf16 %v1229_v29, %v1228_v28 }
 0x1ad   : > { %1776 = vmatmul.msk.bf16.gmra.mxu3 %vm1278_vm1, %v1239_v41 }
 0x1ae   : > { %v1208_v55 = vpop.f32.mrf.mxu2 }
 0x1af   : > { %v1209_v30 = vadd.f32 %v1208_v55, %v1160_v38 }
 0x1b0   : > { %v1161_v52 = vpop.f32.mrf.mxu1 }
 0x1b1   : > { %v1162_v43 = vadd.f32 %v1161_v52, %v1113_v37  ;;  %v1230_v48 = vmax.f32 %v1209_v30, 0.0 }
 0x1b6   : > { %v1210_v40 = vpop.f32.mrf.mxu2 }
 0x1b7   : > { %v1211_v45 = vadd.f32 %v1210_v40, %v1162_v43 }
 0x1b8   : > { %v1164_v46 = vpop.f32.mrf.mxu1 }
 0x1b9   : > { %v1231_v49 = vmax.f32 %v1211_v45, 0.0  ;;  %v1165_v15 = vadd.f32 %v1164_v46, %v1116_v19 }
 0x1bb   : > { %v1240_v50 = vpack.c.bf16 %v1231_v49, %v1230_v48 }
 0x1bd   : > { %1777 = vmatmul.msk.bf16.gmra.mxu3 %vm1278_vm1, %v1240_v50 }
 0x1be   : > { %v1213_v35 = vpop.f32.mrf.mxu2 }
 0x1bf   : > { %v1214_v58 = vadd.f32 %v1213_v35, %v1165_v15 }
 0x1c0   : > { %v1166_v6 = vpop.f32.mrf.mxu1 }
 0x1c1   : > { %v1167_v25 = vadd.f32 %v1166_v6, %v1118_v53  ;;  %v1232_v61 = vmax.f32 %v1214_v58, 0.0  ;;  %v1887_v58 = vld [vmem:[%s2392_s6] ss:$0 sm:$0xff] }
 0x1c6   : > { %v1215_v59 = vpop.f32.mrf.mxu2 }
 0x1c7   : > { %v1216_v60 = vadd.f32 %v1215_v59, %v1167_v25 }
 0x1c9   : > { %v1233_v1 = vmax.f32 %v1216_v60, 0.0 }
 0x1cb   : > { %v1241_v62 = vpack.c.bf16 %v1233_v1, %v1232_v61 }
 0x1cd   : > { %1778 = vmatmul.msk.bf16.gmra.mxu3 %vm1278_vm1, %v1241_v62 }
 0x1e0   : > { %v1312_v56 = vpop.f32.mrf.mxu3 }
 0x1e1   : > { %v1313_v26 = vadd.f32 %v1886_v34, %v1312_v56 }
 0x1e3   : > { %v1352_v4 = vmax.f32 %v1313_v26, 0.0 }
 0x1e8   : > { %v1314_v2 = vpop.f32.mrf.mxu3 }
 0x1e9   : > { %v1315_v3 = vadd.f32 %v1886_v34, %v1314_v2 }
 0x1eb   : > { %v1353_v21 = vmax.f32 %v1315_v3, 0.0 }
 0x1ed   : > { %v1368_v5 = vpack.c.bf16 %v1353_v21, %v1352_v4 }
 0x1ef   : > { %1787 = vmatmul.msk.bf16.vlgmr.msra.gmra.mxu0 %vm1396_vm2, %v1368_v5 }
 0x1f0   : > { %v1317_v47 = vpop.f32.mrf.mxu3 }
 0x1f1   : > { %v1318_v7 = vadd.f32 %v1886_v34, %v1317_v47 }
 0x1f3   : > { %v1354_v33 = vmax.f32 %v1318_v7, 0.0 }
 0x1f8   : > { %v1319_v9 = vpop.f32.mrf.mxu3 }
 0x1f9   : > { %v1320_v10 = vadd.f32 %v1886_v34, %v1319_v9 }
 0x1fb   : > { %v1355_v11 = vmax.f32 %v1320_v10, 0.0 }
 0x1fd   : > { %v1369_v27 = vpack.c.bf16 %v1355_v11, %v1354_v33 }
 0x1ff   : > { %1788 = vmatmul.msk.bf16.gmra.mxu0 %vm1396_vm2, %v1369_v27 }
 0x200   : > { %v1322_v12 = vpop.f32.mrf.mxu3 }
 0x201   : > { %v1323_v42 = vadd.f32 %v1886_v34, %v1322_v12 }
 0x203   : > { %v1356_v16 = vmax.f32 %v1323_v42, 0.0 }
 0x208   : > { %v1324_v13 = vpop.f32.mrf.mxu3 }
 0x209   : > { %v1325_v14 = vadd.f32 %v1886_v34, %v1324_v13 }
 0x20b   : > { %v1357_v44 = vmax.f32 %v1325_v14, 0.0 }
 0x20d   : > { %v1370_v17 = vpack.c.bf16 %v1357_v44, %v1356_v16 }
 0x20f   : > { %1789 = vmatmul.msk.bf16.gmra.mxu0 %vm1396_vm2, %v1370_v17 }
 0x210   : > { %v1327_v18 = vpop.f32.mrf.mxu3 }
 0x211   : > { %v1328_v20 = vadd.f32 %v1886_v34, %v1327_v18 }
 0x213   : > { %v1358_v24 = vmax.f32 %v1328_v20, 0.0 }
 0x218   : > { %v1329_v22 = vpop.f32.mrf.mxu3 }
 0x219   : > { %v1330_v23 = vadd.f32 %v1886_v34, %v1329_v22 }
 0x21b   : > { %v1359_v28 = vmax.f32 %v1330_v23, 0.0 }
 0x21d   : > { %v1371_v29 = vpack.c.bf16 %v1359_v28, %v1358_v24 }
 0x21f   : > { %1790 = vmatmul.msk.bf16.gmra.mxu0 %vm1396_vm2, %v1371_v29 }
 0x220   : > { %v1332_v41 = vpop.f32.mrf.mxu3 }
 0x221   : > { %v1333_v57 = vadd.f32 %v1886_v34, %v1332_v41 }
 0x223   : > { %v1360_v36 = vmax.f32 %v1333_v57, 0.0 }
 0x228   : > { %v1334_v32 = vpop.f32.mrf.mxu3 }
 0x229   : > { %v1335_v55 = vadd.f32 %v1886_v34, %v1334_v32 }
 0x22b   : > { %v1361_v52 = vmax.f32 %v1335_v55, 0.0 }
 0x22d   : > { %v1372_v31 = vpack.c.bf16 %v1361_v52, %v1360_v36 }
 0x22f   : > { %1791 = vmatmul.msk.bf16.gmra.mxu0 %vm1396_vm2, %v1372_v31 }
 0x230   : > { %v1337_v63 = vpop.f32.mrf.mxu3 }
 0x231   : > { %v1338_v37 = vadd.f32 %v1886_v34, %v1337_v63 }
 0x233   : > { %v1362_v43 = vmax.f32 %v1338_v37, 0.0 }
 0x238   : > { %v1339_v38 = vpop.f32.mrf.mxu3 }
 0x239   : > { %v1340_v30 = vadd.f32 %v1886_v34, %v1339_v38 }
 0x23b   : > { %v1363_v39 = vmax.f32 %v1340_v30, 0.0 }
 0x23d   : > { %v1373_v40 = vpack.c.bf16 %v1363_v39, %v1362_v43 }
 0x23f   : > { %1792 = vmatmul.msk.bf16.gmra.mxu0 %vm1396_vm2, %v1373_v40 }
 0x240   : > { %v1342_v45 = vpop.f32.mrf.mxu3 }
 0x241   : > { %v1343_v46 = vadd.f32 %v1886_v34, %v1342_v45 }
 0x243   : > { %v1364_v50 = vmax.f32 %v1343_v46, 0.0 }
 0x248   : > { %v1344_v48 = vpop.f32.mrf.mxu3 }
 0x249   : > { %v1345_v49 = vadd.f32 %v1886_v34, %v1344_v48 }
 0x24b   : > { %v1365_v0 = vmax.f32 %v1345_v49, 0.0 }
 0x24d   : > { %v1374_v8 = vpack.c.bf16 %v1365_v0, %v1364_v50 }
 0x24f   : > { %1793 = vmatmul.msk.bf16.gmra.mxu0 %vm1396_vm2, %v1374_v8 }
 0x250   : > { %v1347_v35 = vpop.f32.mrf.mxu3 }
 0x251   : > { %v1348_v51 = vadd.f32 %v1886_v34, %v1347_v35 }
 0x253   : > { %v1366_v6 = vmax.f32 %v1348_v51, 0.0 }
 0x258   : > { %v1349_v54 = vpop.f32.mrf.mxu3 }
 0x259   : > { %v1350_v19 = vadd.f32 %v1886_v34, %v1349_v54 }
 0x25b   : > { %v1367_v53 = vmax.f32 %v1350_v19, 0.0 }
 0x25d   : > { %v1375_v15 = vpack.c.bf16 %v1367_v53, %v1366_v6 }
 0x25f   : > { %1794 = vmatmul.msk.bf16.gmra.mxu0 %vm1396_vm2, %v1375_v15 }
 0x26c   : > { %v1430_v25 = vpop.f32.mrf.mxu0 }
 0x26d   : > { %v1431_v59 = vadd.f32 %v1887_v58, %v1430_v25 }
 0x26f   : > { %1470 = vst [vmem:[%s2365_s27] sm:$0xff] %v1431_v59 }
 0x274   : > { %v1432_v60 = vpop.f32.mrf.mxu0 }
 0x275   : > { %v1433_v61 = vadd.f32 %v1887_v58, %v1432_v60 }
 0x277   : > { %1471 = vst [vmem:[%s2365_s27 + $0x8] sm:$0xff] %v1433_v61 }
 0x27c   : > { %v1435_v1 = vpop.f32.mrf.mxu0 }
 0x27d   : > { %v1436_v62 = vadd.f32 %v1887_v58, %v1435_v1 }
 0x27f   : > { %1472 = vst [vmem:[%s2365_s27 + $0x10] sm:$0xff] %v1436_v62 }
 0x284   : > { %v1437_v56 = vpop.f32.mrf.mxu0 }
 0x285   : > { %v1438_v34 = vadd.f32 %v1887_v58, %v1437_v56 }
 0x287   : > { %1473 = vst [vmem:[%s2365_s27 + $0x18] sm:$0xff] %v1438_v34 }
 0x28c   : > { %v1440_v26 = vpop.f32.mrf.mxu0 }
 0x28d   : > { %v1441_v2 = vadd.f32 %v1887_v58, %v1440_v26 }
 0x28f   : > { %1474 = vst [vmem:[%s2365_s27 + $0x20] sm:$0xff] %v1441_v2 }
 0x294   : > { %v1442_v3 = vpop.f32.mrf.mxu0 }
 0x295   : > { %v1443_v4 = vadd.f32 %v1887_v58, %v1442_v3 }
 0x297   : > { %1475 = vst [vmem:[%s2365_s27 + $0x28] sm:$0xff] %v1443_v4 }
 0x29c   : > { %v1445_v21 = vpop.f32.mrf.mxu0 }
 0x29d   : > { %v1446_v5 = vadd.f32 %v1887_v58, %v1445_v21 }
 0x29f   : > { %1476 = vst [vmem:[%s2365_s27 + $0x30] sm:$0xff] %v1446_v5 }
 0x2a4   : > { %v1447_v47 = vpop.f32.mrf.mxu0 }
 0x2a5   : > { %v1448_v7 = vadd.f32 %v1887_v58, %v1447_v47 }
 0x2a7   : > { %1477 = vst [vmem:[%s2365_s27 + $0x38] sm:$0xff] %v1448_v7 }
 0x2ac   : > { %v1450_v9 = vpop.f32.mrf.mxu0 }
 0x2ad   : > { %v1451_v10 = vadd.f32 %v1887_v58, %v1450_v9 }
 0x2af   : > { %1478 = vst [vmem:[%s2365_s27 + $0x40] sm:$0xff] %v1451_v10 }
 0x2b4   : > { %v1452_v33 = vpop.f32.mrf.mxu0 }
 0x2b5   : > { %v1453_v11 = vadd.f32 %v1887_v58, %v1452_v33 }
 0x2b7   : > { %1479 = vst [vmem:[%s2365_s27 + $0x48] sm:$0xff] %v1453_v11 }
 0x2bc   : > { %v1455_v27 = vpop.f32.mrf.mxu0 }
 0x2bd   : > { %v1456_v12 = vadd.f32 %v1887_v58, %v1455_v27 }
 0x2bf   : > { %1480 = vst [vmem:[%s2365_s27 + $0x50] sm:$0xff] %v1456_v12 }
 0x2c4   : > { %v1457_v42 = vpop.f32.mrf.mxu0 }
 0x2c5   : > { %v1458_v13 = vadd.f32 %v1887_v58, %v1457_v42 }
 0x2c7   : > { %1481 = vst [vmem:[%s2365_s27 + $0x58] sm:$0xff] %v1458_v13 }
 0x2cc   : > { %v1460_v14 = vpop.f32.mrf.mxu0 }
 0x2cd   : > { %v1461_v16 = vadd.f32 %v1887_v58, %v1460_v14 }
 0x2cf   : > { %1482 = vst [vmem:[%s2365_s27 + $0x60] sm:$0xff] %v1461_v16 }
 0x2d4   : > { %v1462_v44 = vpop.f32.mrf.mxu0 }
 0x2d5   : > { %v1463_v17 = vadd.f32 %v1887_v58, %v1462_v44 }
 0x2d7   : > { %1483 = vst [vmem:[%s2365_s27 + $0x68] sm:$0xff] %v1463_v17 }
 0x2dc   : > { %v1465_v18 = vpop.f32.mrf.mxu0 }
 0x2dd   : > { %v1466_v20 = vadd.f32 %v1887_v58, %v1465_v18 }
 0x2df   : > { %1484 = vst [vmem:[%s2365_s27 + $0x70] sm:$0xff] %v1466_v20 }
 0x2e4   : > { %v1467_v22 = vpop.f32.mrf.mxu0 }
 0x2e5   : > { %v1468_v23 = vadd.f32 %v1887_v58, %v1467_v22 }
 0x2e7   : > { %1485 = vst [vmem:[%s2365_s27 + $0x78] sm:$0xff] %v1468_v23 }
 0x2e8 PF: > { %s17_s24 = sadd.s32 1, %s1894_s24  }
 0x2e9   : > { %p14_p4 = scmp.ge.s32.totalorder %s17_s24, 4  }
 0x2eb   :  { %16 = sbr.rel (!%p14_p4) target bundleno = 1 (0x1), region = 78 }

</bundles_post_ra>
